<compile_context>
chip_gen: v6e
topology: v6e:2x2x1
jax: 0.10.0
libtpu: 0.0.40
codegen_flags: <defaults>
</compile_context>

<pallas_src>
import jax
import jax.numpy as jnp
from jax.experimental import pallas as pl
from jax.experimental.pallas import tpu as pltpu


_LANE_CANDIDATES = (4096, 2048, 1024, 512, 256, 128)
_MIN_PALLAS_BYTES = 512 * 1024        # below this, plain XLA wins outright
_TILE_BYTES_DEFAULT = 2 * 1024 * 1024  # safe under v5e's 16 MiB scoped VMEM


# --------------------------------------------------------------------------
# Kernels
# --------------------------------------------------------------------------
def _mul_zero_kernel(x_ref, o_ref):
    # Exact IEEE semantics of `x * 0.0`: NaN/Inf -> NaN, -0.0 stays -0.0.
    o_ref[...] = x_ref[...] * jnp.asarray(0.0, dtype=o_ref.dtype)


def _fill_zero_kernel(o_ref):
    # Input-free variant: write zeros only (no HBM read at all).
    o_ref[...] = jnp.zeros(o_ref.shape, o_ref.dtype)


# --------------------------------------------------------------------------
# Tiling helpers
# --------------------------------------------------------------------------
def _chip_tile_config():
    """(tile_bytes, vmem_limit_bytes) tuned per TPU generation."""
    kind = ""
    try:
        kind = jax.devices()[0].device_kind.lower()
    except Exception:
        pass
    if "v7" in kind:
        # 8 MiB tiles -> (in+out) double-buffered ~32 MiB; set the scoped
        # limit explicitly, leaving headroom under v7x's 64 MiB physical VMEM.
        return 8 * 1024 * 1024, 48 << 20
    if "v6" in kind:
        # ~16 MiB resident, comfortably under v6e's 32 MiB default scoped VMEM.
        return 4 * 1024 * 1024, None
    # v5e / unknown: stay at 2 MiB tiles (16 MiB default scoped VMEM).
    return _TILE_BYTES_DEFAULT, None


def _pick_2d_factorization(total, fallback_lanes):
    """Choose a (lanes, rows) contiguous-reshape factorization of `total`."""
    # Prefer lane-dense (multiple of 128) with at least 8 rows (dense vregs).
    for cand in _LANE_CANDIDATES:
        if total % cand == 0 and total // cand >= 8:
            return cand, total // cand
    for cand in _LANE_CANDIDATES:
        if total % cand == 0:
            return cand, total // cand
    # No 128-multiple divisor: a full-extent last dim is always a legal block,
    # so fall back to the natural (N*C, H*W) flattening.
    return fallback_lanes, total // fallback_lanes


def _row_tile(rows, lanes, itemsize, tile_bytes):
    """Sublane-aligned row-tile size for a (rows, lanes) slab."""
    # Packed sublane granularity: 8 for 32-bit, 16 for bf16, 32 for int8/fp8.
    sub = max(8, (8 * 4) // max(1, itemsize))
    budget_rows = max(1, tile_bytes // max(1, lanes * itemsize))
    # Keep >= ~4 grid steps so v7x's two TensorCores both get work; the extra
    # ~0.35 us/step is negligible on single-TC chips.
    target = min(budget_rows, max(1, pl.cdiv(rows, 4)))
    tile_rows = max(sub, (target // sub) * sub)
    if tile_rows >= rows:
        tile_rows = rows  # full extent along rows: always legal
    return tile_rows


def _compiler_params(vmem_limit):
    return pltpu.CompilerParams(
        dimension_semantics=("parallel",),
        vmem_limit_bytes=vmem_limit,
    )


# --------------------------------------------------------------------------
# 2D slab drivers
# --------------------------------------------------------------------------
def _zero_2d_exact(x2d, tile_bytes, vmem_limit):
    rows, lanes = x2d.shape
    itemsize = jnp.dtype(x2d.dtype).itemsize
    tile_rows = _row_tile(rows, lanes, itemsize, tile_bytes)
    spec = pl.BlockSpec((tile_rows, lanes), lambda i: (i, 0))
    return pl.pallas_call(
        _mul_zero_kernel,
        grid=(pl.cdiv(rows, tile_rows),),
        in_specs=[spec],
        out_specs=spec,
        out_shape=jax.ShapeDtypeStruct((rows, lanes), x2d.dtype),
        compiler_params=_compiler_params(vmem_limit),
    )(x2d)


def _zero_2d_fill(rows, lanes, dtype, tile_bytes, vmem_limit):
    itemsize = jnp.dtype(dtype).itemsize
    tile_rows = _row_tile(rows, lanes, itemsize, tile_bytes)
    spec = pl.BlockSpec((tile_rows, lanes), lambda i: (i, 0))
    return pl.pallas_call(
        _fill_zero_kernel,
        grid=(pl.cdiv(rows, tile_rows),),
        out_specs=spec,
        out_shape=jax.ShapeDtypeStruct((rows, lanes), dtype),
        compiler_params=_compiler_params(vmem_limit),
    )()


# --------------------------------------------------------------------------
# Public wrapper
# --------------------------------------------------------------------------
def zero_forward(x, stride=1, *, exact=True, min_pallas_bytes=_MIN_PALLAS_BYTES):
    """Pallas equivalent of Zero(stride)(x) for NCHW input x.

    exact=True  : output = (subsampled) x * 0.0  (NaN/Inf -> NaN, -0.0 kept)
    exact=False : output = zeros of the subsampled shape (no input read; ~2x
                  less HBM traffic and the stride fuses away for free).
    """
    n, c, h, w = x.shape
    if stride != 1:
        h_out = -(-h // stride)
        w_out = -(-w // stride)
    else:
        h_out, w_out = h, w

    dtype = x.dtype  # TODO(synk): PyTorch promotes int * 0.0 to float; kept as input dtype.
    total = n * c * h_out * w_out
    nbytes = total * jnp.dtype(dtype).itemsize

    if exact and stride != 1:
        # TODO(synk): fuse the spatial subsample into the kernel (needs
        # lane-strided / gathered in-kernel reads); kept as an XLA strided
        # slice so the exact `x * 0.0` NaN/Inf propagation still holds.
        x = x[:, :, ::stride, ::stride]

    # Small-tensor escape hatch: below pallas launch + pipeline-setup cost.
    if nbytes < min_pallas_bytes or total == 0:
        if exact:
            return x * jnp.asarray(0.0, dtype)
        return jnp.zeros((n, c, h_out, w_out), dtype)

    tile_bytes, vmem_limit = _chip_tile_config()
    lanes, rows = _pick_2d_factorization(total, fallback_lanes=h_out * w_out)

    if exact:
        # Contiguous NCHW -> (rows, lanes) reshape is a free metadata change.
        y2d = _zero_2d_exact(x.reshape(rows, lanes), tile_bytes, vmem_limit)
    else:
        y2d = _zero_2d_fill(rows, lanes, dtype, tile_bytes, vmem_limit)
    return y2d.reshape(n, c, h_out, w_out)


# --------------------------------------------------------------------------
# Reference & self-test
# --------------------------------------------------------------------------
def _reference(x, stride):
    if stride == 1:
        return x * 0.0
    return x[:, :, ::stride, ::stride] * 0.0


def _same_with_nan(a, b):
    return bool(jnp.all(jnp.where(jnp.isnan(b), jnp.isnan(a), a == b)))


if __name__ == "__main__":
    key = jax.random.PRNGKey(0)
    x = jax.random.normal(key, (2, 4, 16, 16), dtype=jnp.float32)

    # Default path (small tensor -> XLA escape hatch).
    for s in (1, 2):
        y = jax.block_until_ready(zero_forward(x, stride=s))
        ref = _reference(x, s)
        assert y.shape == ref.shape and y.dtype == ref.dtype
        assert jnp.array_equal(y, ref)

    # Force the Pallas exact kernel on the same small input.
    for s in (1, 2):
        y = jax.block_until_ready(zero_forward(x, stride=s, min_pallas_bytes=0))
        ref = _reference(x, s)
        assert y.shape == ref.shape and y.dtype == ref.dtype
        assert jnp.array_equal(y, ref)

    # NaN/Inf propagation on the exact path (matches PyTorch x * 0.0).
    x_nan = x.at[0, 0, 0, 0].set(jnp.nan).at[1, 2, 3, 4].set(jnp.inf)
    y = jax.block_until_ready(zero_forward(x_nan, stride=1, min_pallas_bytes=0))
    assert _same_with_nan(y, _reference(x_nan, 1))

    # Odd shape: exercises the non-128-divisible full-extent-lane fallback.
    x_odd = jax.random.normal(key, (2, 3, 9, 11), dtype=jnp.float32)
    for s in (1, 2):
        y = jax.block_until_ready(zero_forward(x_odd, stride=s, min_pallas_bytes=0))
        ref = _reference(x_odd, s)
        assert y.shape == ref.shape and jnp.array_equal(y, ref)

    # Input-free zeros fast path (exact=False): stride fused, no input read.
    for s in (1, 2):
        y = jax.block_until_ready(
            zero_forward(x, stride=s, exact=False, min_pallas_bytes=0))
        ref = _reference(x, s)
        assert y.shape == ref.shape and y.dtype == ref.dtype
        assert jnp.array_equal(y, ref)

    # Slightly larger bf16 input: exercises the multi-step tiled pipeline.
    x_big = jax.random.normal(key, (4, 32, 32, 32), dtype=jnp.bfloat16)
    for s in (1, 2):
        y = jax.block_until_ready(zero_forward(x_big, stride=s, min_pallas_bytes=0))
        ref = _reference(x_big, s)
        assert y.shape == ref.shape and y.dtype == ref.dtype
        assert jnp.array_equal(y, ref)

    print("KERNEL_OK")
</pallas_src>

<mosaic_0001>
module attributes {stable_mosaic.version = 11 : i64} {
  func.func @_mul_zero_kernel(%arg0: i32, %arg1: memref<8x256xf32, #tpu.memory_space<vmem>>, %arg2: memref<8x256xf32, #tpu.memory_space<vmem>>) attributes {dimension_semantics = [#tpu.dimension_semantics<parallel>], iteration_bounds = array<i64: 1>, scalar_prefetch = 0 : i64, scratch_operands = 0 : i64, tpu.core_type = #tpu.core_type<tc>, window_params = [{transform_indices = @transform_0, window_bounds = array<i64: 8, 256>}, {transform_indices = @transform_1, window_bounds = array<i64: 8, 256>}]} {
    %c0 = arith.constant 0 : index
    %c0_0 = arith.constant 0 : index
    %0 = vector.load %arg1[%c0, %c0_0] : memref<8x256xf32, #tpu.memory_space<vmem>>, vector<8x256xf32>
    %cst = arith.constant 0.000000e+00 : f32
    %1 = vector.broadcast %cst : f32 to vector<8x256xf32>
    %2 = arith.mulf %0, %1 : vector<8x256xf32>
    %c0_1 = arith.constant 0 : index
    %c0_2 = arith.constant 0 : index
    %3 = vector.load %arg2[%c0_1, %c0_2] : memref<8x256xf32, #tpu.memory_space<vmem>>, vector<8x256xf32>
    tpu.vector_store %arg2[%c0_1, %c0_2], %2 {strides = array<i32>} : memref<8x256xf32, #tpu.memory_space<vmem>>, vector<8x256xf32>,
    return
  }
  func.func @transform_0(%arg0: i32) -> (i32, i32) {
    %c0_i32 = arith.constant 0 : i32
    %c0_i32_0 = arith.constant 0 : i32
    return %arg0, %c0_i32 : i32, i32
  }
  func.func @transform_1(%arg0: i32) -> (i32, i32) {
    %c0_i32 = arith.constant 0 : i32
    %c0_i32_0 = arith.constant 0 : i32
    return %arg0, %c0_i32 : i32, i32
  }
}

</mosaic_0001>

<bundles_post_ra>
// kernel: tpu_custom_call.1
= control target key start
LH: loop header
LB: loop body
LE: loop exit
PB: predicated region body
PF: predicated region fallthrough
CT: control target
= control target key end

     0   :  { %6 = vsyncpa [#allocation3], 0  ;;  %s106_s0 = inlined_call_operand.hbm [shape: f32[8,256], index: 0, kind: input, shape index: {}]   ;;  %s107_s1 = inlined_call_operand.hbm [shape: f32[8,256], index: 1, kind: output, shape index: {}]  }
   0x1   :  { %7 = vsyncpa [#allocation4], 0  ;;  %s88_s6 = smov [#allocation2]  }
   0x2   :  { %s14_s7 = sshll.u32 %s88_s6, 4  ;;  %s15_s7 = int_to_ptr.vmem [resolvable:$true] %s14_s7 }
   0x3   :  { %s52_s8 = scalar_lea.vmem %s15_s7, 256  ;;  %p57_p1 = scmp.lt.s32.totalorder %s15_s7, %s15_s7 }
   0x4   :  { %p53_p0 = scmp.ne.s32.totalorder %s15_s7, %s52_s8  ;;  %p58_p2 = scmp.lt.s32.totalorder %s52_s8, %s52_s8 }
   0x6   :  { %p59_p3 = por %p58_p2, %p57_p1 }
   0x8   :  { %p60_p4 = pnand %p59_p3, %p53_p0 }
   0xa   :  { %63 = shalt.err (!%p60_p4)
}
   0xb   :  { %17 = dma.hbm_to_vmem [thread:$0]  %s106_s0, 256, %s15_s7, [#allocation3]  }
   0xc   :  { %84 = dma.done.wait [#allocation3], 256  }
   0xd   :  { %85 = vsyncadd [#allocation3], 4294967040  ;;  %s89_s11 = smov [#allocation5]   ;;  %v21_v0 = vld [vmem:[#allocation2] sm:$0xff]  ;;  %v22_v1 = vld [vmem:[#allocation2 + $0x8] sm:$0xff] }
   0xe   :  { %s33_s12 = sshll.u32 %s89_s11, 4  ;;  %v23_v2 = vmul.f32 0.0, %v21_v0  ;;  %v24_v3 = vmul.f32 0.0, %v22_v1  ;;  %s34_s12 = int_to_ptr.vmem [resolvable:$true] %s33_s12 }
   0xf   :  { %s64_s13 = scalar_lea.vmem %s34_s12, 256  ;;  %p69_p6 = scmp.lt.s32.totalorder %s34_s12, %s34_s12 }
  0x10   :  { %25 = vst [vmem:[#allocation5] sm:$0xff] %v23_v2  ;;  %26 = vst [vmem:[#allocation5 + $0x8] sm:$0xff] %v24_v3  ;;  %p65_p5 = scmp.ne.s32.totalorder %s34_s12, %s64_s13  ;;  %p70_p7 = scmp.lt.s32.totalorder %s64_s13, %s64_s13 }
  0x12   :  { %p71_p8 = por %p70_p7, %p69_p6 }
  0x14   :  { %p72_p9 = pnand %p71_p8, %p65_p5 }
  0x16   :  { %75 = shalt.err (!%p72_p9)
}
  0x17   :  { %36 = dma.vmem_to_hbm [thread:$0]  %s34_s12, 256, %s107_s1, [#allocation4]  }
  0x18   :  { %86 = dma.done.wait [#allocation4], 256  }
  0x19   :  { %87 = vsyncadd [#allocation4], 4294967040 }
  0x1a   :  { %40 = vsyncpa [#allocation3], 1 }
  0x1b   :  { %41 = vsyncpa [#allocation4], 1 }

</bundles_post_ra>
